<compile_context>
chip_gen: v5e
topology: v5e:2x2
jax: 0.10.0
libtpu: 0.0.40
codegen_flags: <defaults>
</compile_context>

<pallas_src>
import jax
import jax.numpy as jnp
from jax.experimental import pallas as pl
from jax.experimental.pallas import tpu as pltpu

EPS = 1e-12


def _add_layernorm_kernel(x_ref, pe_ref, g_ref, beta_ref, o_ref):
    # x_ref:    (TB, TS, D)  activation tile
    # pe_ref:   (TS, D)      position embedding tile (f32, reused across the inner batch loop)
    # g_ref:    (1, D)       LayerNorm gamma
    # beta_ref: (1, D)       LayerNorm beta
    x = x_ref[...]
    if x.dtype != jnp.float32:
        x = x.astype(jnp.float32)

    e = x + pe_ref[...][None, :, :]                     # (TB, TS, D), f32

    # Two-pass TF-style LayerNorm over the lane (last) dim.
    u = jnp.mean(e, axis=-1, keepdims=True)             # mean
    d = e - u
    var = jnp.mean(d * d, axis=-1, keepdims=True)       # E[(x-u)^2]
    xn = d * jax.lax.rsqrt(var + EPS)

    out = g_ref[...][None, :, :] * xn + beta_ref[...][None, :, :]

    # Dropout: identity (eval mode).  # TODO(synk): training-mode dropout via pltpu PRNG if needed.
    o_ref[...] = out.astype(o_ref.dtype)


def embeddings_forward(x, T, P_row, P_col, params, cfg):
    """x: (B, S, D).  T, P_row, P_col: (S,) float32.  Eval-mode forward."""
    B, S, D = x.shape
    max_len = cfg["max_len"]
    rows = cfg["frame_size"]["rows"]
    cols = cfg["frame_size"]["cols"]
    p0, p1 = cfg["patch_size"]

    # Grid-invariant position embedding: tiny (S,3)@(3,D) + bias, hoisted out of the kernel
    # (K=3 contraction would waste the MXU and force per-step re-DMA of pos/W/b).
    pos = jnp.stack(
        [T / (max_len - 1), P_row / (rows - p0 - 1), P_col / (cols - p1 - 1)],
        axis=-1,
    ).astype(jnp.float32)                                              # (S, 3)
    pos_emb = (
        pos @ params["lin_w"].astype(jnp.float32)
        + params["lin_b"].astype(jnp.float32)
    ).astype(jnp.float32)                                              # (S, D)

    gamma = params["gamma"].reshape(1, D).astype(jnp.float32)
    beta = params["beta"].reshape(1, D).astype(jnp.float32)

    # --- Tile selection: pure HBM-streaming op.
    # TS: fixed 512-row tiles (HBM-roofline sweet spot) or the full S if it is small;
    #     512 and S are both legal last-two-dim block sizes (512 % 8 == 0 / full extent).
    elem = x.dtype.itemsize
    TS = S if S <= 512 else 512

    # TB: target ~2 MiB per x block so the grid keeps enough steps for double-buffering
    # and the v7x megacore split; ragged blocks are handled by the cdiv grid.
    target_block_bytes = 2 * 1024 * 1024
    TB = max(1, min(B, target_block_bytes // max(TS * D * elem, 1)))
    while TB > 1 and pl.cdiv(S, TS) * pl.cdiv(B, TB) < 8:
        TB = max(1, TB // 2)

    grid = (pl.cdiv(S, TS), pl.cdiv(B, TB))   # seq axis OUTER -> pos_emb reused across batch loop

    # VMEM residency: x + out blocks (double-buffered, x.dtype), ~3 f32 tile intermediates
    # (e, d, xn/out), pos_emb tile (double-buffered), gamma/beta.
    block_elems = TB * TS * D
    resident = (
        2 * 2 * block_elems * elem
        + 3 * block_elems * 4
        + 2 * TS * D * 4
        + 4 * D * 4
    )
    # Generation-safe ceiling: 48 MiB stays within v7x's 64 MiB physical VMEM per TensorCore.
    vmem_limit = int(min(max(2 * resident, 16 << 20), 48 << 20))

    grid_spec = pltpu.PrefetchScalarGridSpec(
        num_scalar_prefetch=0,
        grid=grid,
        in_specs=[
            pl.BlockSpec((TB, TS, D), lambda si, bi: (bi, si, 0)),  # x
            pl.BlockSpec((TS, D), lambda si, bi: (si, 0)),          # pos_emb (constant over bi)
            pl.BlockSpec((1, D), lambda si, bi: (0, 0)),            # gamma (fetched once)
            pl.BlockSpec((1, D), lambda si, bi: (0, 0)),            # beta  (fetched once)
        ],
        out_specs=pl.BlockSpec((TB, TS, D), lambda si, bi: (bi, si, 0)),
    )

    return pl.pallas_call(
        _add_layernorm_kernel,
        out_shape=jax.ShapeDtypeStruct((B, S, D), x.dtype),
        grid_spec=grid_spec,
        compiler_params=pltpu.CompilerParams(
            dimension_semantics=("parallel", "parallel"),
            vmem_limit_bytes=vmem_limit,
        ),
    )(x, pos_emb, gamma, beta)


def _reference(x, T, P_row, P_col, params, cfg):
    """Pure-JAX reference mirroring the PyTorch forward (eval mode)."""
    max_len = cfg["max_len"]
    rows = cfg["frame_size"]["rows"]
    cols = cfg["frame_size"]["cols"]
    p0, p1 = cfg["patch_size"]
    pos = jnp.stack(
        [T / (max_len - 1), P_row / (rows - p0 - 1), P_col / (cols - p1 - 1)], axis=-1
    )
    pe = pos @ params["lin_w"] + params["lin_b"]         # (S, D)
    e = x + pe[None, :, :]
    u = jnp.mean(e, axis=-1, keepdims=True)
    s = jnp.mean((e - u) ** 2, axis=-1, keepdims=True)
    xn = (e - u) / jnp.sqrt(s + EPS)
    return params["gamma"] * xn + params["beta"]


if __name__ == "__main__":
    cfg = {
        "operation_with_pos_encoding": "sum",
        "max_len": 64,
        "dim": 128,
        "frame_size": {"rows": 20, "cols": 20},
        "patch_size": (3, 3),
        "p_drop_hidden": 0.0,
    }
    B, S, D = 2, 16, cfg["dim"]

    key = jax.random.PRNGKey(0)
    kx, kt, kr, kc, kw, kb = jax.random.split(key, 6)

    x = jax.random.normal(kx, (B, S, D), dtype=jnp.float32)
    T = jax.random.randint(kt, (S,), 0, cfg["max_len"]).astype(jnp.float32)
    P_row = jax.random.randint(kr, (S,), 0, cfg["frame_size"]["rows"]).astype(jnp.float32)
    P_col = jax.random.randint(kc, (S,), 0, cfg["frame_size"]["cols"]).astype(jnp.float32)

    # Deterministic synthetic parameters (nn.Linear(3, dim) + LayerNorm(dim)).
    params = {
        "lin_w": jax.random.normal(kw, (3, D), dtype=jnp.float32) * 0.1,   # Linear(3, D).weight.T
        "lin_b": jax.random.normal(kb, (D,), dtype=jnp.float32) * 0.1,
        "gamma": jnp.ones((D,), dtype=jnp.float32),
        "beta": jnp.zeros((D,), dtype=jnp.float32),
    }

    out = embeddings_forward(x, T, P_row, P_col, params, cfg)
    out = jax.block_until_ready(out)

    ref = _reference(x, T, P_row, P_col, params, cfg)
    assert out.shape == (B, S, D)
    assert jnp.allclose(out, ref, atol=1e-4, rtol=1e-4)

    print("KERNEL_OK")
</pallas_src>

<mosaic_0001>
module attributes {stable_mosaic.version = 11 : i64} {
  func.func @_add_layernorm_kernel(%arg0: i32, %arg1: i32, %arg2: memref<1x16x128xf32, #tpu.memory_space<vmem>>, %arg3: memref<16x128xf32, #tpu.memory_space<vmem>>, %arg4: memref<1x128xf32, #tpu.memory_space<vmem>>, %arg5: memref<1x128xf32, #tpu.memory_space<vmem>>, %arg6: memref<1x16x128xf32, #tpu.memory_space<vmem>>) attributes {dimension_semantics = [#tpu.dimension_semantics<parallel>, #tpu.dimension_semantics<parallel>], iteration_bounds = array<i64: 1, 2>, scalar_prefetch = 0 : i64, scratch_operands = 0 : i64, tpu.core_type = #tpu.core_type<tc>, window_params = [{transform_indices = @transform_0, window_bounds = array<i64: 1, 16, 128>}, {transform_indices = @transform_1, window_bounds = array<i64: 16, 128>}, {pipeline_mode = #tpu.pipeline_mode<synchronous>, transform_indices = @transform_2, window_bounds = array<i64: 1, 128>}, {pipeline_mode = #tpu.pipeline_mode<synchronous>, transform_indices = @transform_3, window_bounds = array<i64: 1, 128>}, {transform_indices = @transform_4, window_bounds = array<i64: 1, 16, 128>}]} {
    %c0 = arith.constant 0 : index
    %c0_0 = arith.constant 0 : index
    %c0_1 = arith.constant 0 : index
    %0 = vector.load %arg2[%c0, %c0_0, %c0_1] : memref<1x16x128xf32, #tpu.memory_space<vmem>>, vector<1x16x128xf32>
    %c0_2 = arith.constant 0 : index
    %c0_3 = arith.constant 0 : index
    %1 = vector.load %arg3[%c0_2, %c0_3] : memref<16x128xf32, #tpu.memory_space<vmem>>, vector<16x128xf32>
    %2 = vector.shape_cast %1 : vector<16x128xf32> to vector<1x16x128xf32>
    %3 = arith.addf %0, %2 : vector<1x16x128xf32>
    %cst = arith.constant dense<0.000000e+00> : vector<1x16xf32>
    %4 = vector.multi_reduction <add>, %3, %cst [2] : vector<1x16x128xf32> to vector<1x16xf32>
    %5 = vector.shape_cast %4 : vector<1x16xf32> to vector<1x16x1xf32>
    %cst_4 = arith.constant 1.280000e+02 : f32
    %6 = vector.broadcast %cst_4 : f32 to vector<1x16x1xf32>
    %7 = arith.divf %5, %6 : vector<1x16x1xf32>
    %8 = vector.broadcast %7 : vector<1x16x1xf32> to vector<1x16x128xf32>
    %9 = arith.subf %3, %8 : vector<1x16x128xf32>
    %10 = arith.mulf %9, %9 : vector<1x16x128xf32>
    %cst_5 = arith.constant dense<0.000000e+00> : vector<1x16xf32>
    %11 = vector.multi_reduction <add>, %10, %cst_5 [2] : vector<1x16x128xf32> to vector<1x16xf32>
    %12 = vector.shape_cast %11 : vector<1x16xf32> to vector<1x16x1xf32>
    %cst_6 = arith.constant 1.280000e+02 : f32
    %13 = vector.broadcast %cst_6 : f32 to vector<1x16x1xf32>
    %14 = arith.divf %12, %13 : vector<1x16x1xf32>
    %cst_7 = arith.constant 9.99999996E-13 : f32
    %15 = vector.broadcast %cst_7 : f32 to vector<1x16x1xf32>
    %16 = arith.addf %14, %15 : vector<1x16x1xf32>
    %17 = math.rsqrt %16 : vector<1x16x1xf32>
    %18 = vector.broadcast %17 : vector<1x16x1xf32> to vector<1x16x128xf32>
    %19 = arith.mulf %9, %18 : vector<1x16x128xf32>
    %c0_8 = arith.constant 0 : index
    %c0_9 = arith.constant 0 : index
    %20 = vector.load %arg4[%c0_8, %c0_9] : memref<1x128xf32, #tpu.memory_space<vmem>>, vector<1x128xf32>
    %21 = vector.shape_cast %20 : vector<1x128xf32> to vector<1x1x128xf32>
    %22 = vector.broadcast %21 : vector<1x1x128xf32> to vector<1x16x128xf32>
    %23 = arith.mulf %22, %19 : vector<1x16x128xf32>
    %c0_10 = arith.constant 0 : index
    %c0_11 = arith.constant 0 : index
    %24 = vector.load %arg5[%c0_10, %c0_11] : memref<1x128xf32, #tpu.memory_space<vmem>>, vector<1x128xf32>
    %25 = vector.shape_cast %24 : vector<1x128xf32> to vector<1x1x128xf32>
    %26 = vector.broadcast %25 : vector<1x1x128xf32> to vector<1x16x128xf32>
    %27 = arith.addf %23, %26 : vector<1x16x128xf32>
    %c0_12 = arith.constant 0 : index
    %c0_13 = arith.constant 0 : index
    %c0_14 = arith.constant 0 : index
    %28 = vector.load %arg6[%c0_12, %c0_13, %c0_14] : memref<1x16x128xf32, #tpu.memory_space<vmem>>, vector<1x16x128xf32>
    tpu.vector_store %arg6[%c0_12, %c0_13, %c0_14], %27 {strides = array<i32>} : memref<1x16x128xf32, #tpu.memory_space<vmem>>, vector<1x16x128xf32>,
    return
  }
  func.func @transform_0(%arg0: i32, %arg1: i32) -> (i32, i32, i32) {
    %c0_i32 = arith.constant 0 : i32
    %c0_i32_0 = arith.constant 0 : i32
    return %arg1, %arg0, %c0_i32 : i32, i32, i32
  }
  func.func @transform_1(%arg0: i32, %arg1: i32) -> (i32, i32) {
    %c0_i32 = arith.constant 0 : i32
    %c0_i32_0 = arith.constant 0 : i32
    return %arg0, %c0_i32 : i32, i32
  }
  func.func @transform_2(%arg0: i32, %arg1: i32) -> (i32, i32) {
    %c0_i32 = arith.constant 0 : i32
    %c0_i32_0 = arith.constant 0 : i32
    %c0_i32_1 = arith.constant 0 : i32
    return %c0_i32, %c0_i32_0 : i32, i32
  }
  func.func @transform_3(%arg0: i32, %arg1: i32) -> (i32, i32) {
    %c0_i32 = arith.constant 0 : i32
    %c0_i32_0 = arith.constant 0 : i32
    %c0_i32_1 = arith.constant 0 : i32
    return %c0_i32, %c0_i32_0 : i32, i32
  }
  func.func @transform_4(%arg0: i32, %arg1: i32) -> (i32, i32, i32) {
    %c0_i32 = arith.constant 0 : i32
    %c0_i32_0 = arith.constant 0 : i32
    return %arg1, %arg0, %c0_i32 : i32, i32, i32
  }
}

</mosaic_0001>

<bundles_post_ra>
// kernel: tpu_custom_call.1
= control target key start
LH: loop header
LB: loop body
LE: loop exit
PB: predicated region body
PF: predicated region fallthrough
CT: control target
= control target key end

     0   :  { %s897_s0 = inlined_call_operand.hbm [shape: f32[2,16,128], index: 0, kind: input, shape index: {}]   ;;  %s898_s1 = inlined_call_operand.hbm [shape: f32[16,128], index: 1, kind: input, shape index: {}]   ;;  %s899_s2 = inlined_call_operand.vmem [shape: f32[1,128], index: 2, kind: input, shape index: {}]   ;;  %s900_s3 = inlined_call_operand.vmem [shape: f32[1,128], index: 3, kind: input, shape index: {}]   ;;  %s901_s4 = inlined_call_operand.hbm [shape: f32[2,16,128], index: 4, kind: output, shape index: {}]  }
   0x1   :  { %905 = sst [smem:[#allocation12_spill]] %s898_s1 }
   0x2   :  { %9 = vsyncpa [#allocation3], 0 }
   0x3   :  { %11 = vsyncpa [#allocation3 + $0x1], 0 }
   0x4   :  { %12 = vsyncpa [#allocation6], 0 }
   0x5   :  { %13 = vsyncpa [#allocation4], 0 }
   0x6   :  { %15 = vsyncpa [#allocation4 + $0x1], 0  ;;  %s732_s15 = smov 0   ;;  %s734_s16 = smov 0  }
   0x7   :  { %s736_s17 = smov 0   ;;  %s738_s18 = smov 0  }
   0x8   :  { %s740_s19 = smov 0   ;;  %s742_s20 = smov 0  }
   0x9 LB: > { %s448_s21 = sadd.s32 4294967295, %s699_s20   ;;  %s449_s22 = sadd.s32 4294967294, %s699_s20   ;;  %s699_s20 = sphi %s742_s20, %s21_s20   ;;  %s695_s19 = sphi %s740_s19, %s922_s19   ;;  %s691_s18 = sphi %s738_s18, %s921_s18   ;;  %s687_s17 = sphi %s736_s17, %s920_s17   ;;  %s683_s16 = sphi %s734_s16, %s919_s16   ;;  %s679_s15 = sphi %s732_s15, %s918_s15  }
   0xa   : > { %p55_p0 = scmp.ne.s32.totalorder %s683_s16, %s679_s15  ;;  %p766_p1 = scmp.eq.s32.totalorder %s448_s21, 0 }
   0xb   : > { %p770_p2 = scmp.eq.s32.totalorder %s448_s21, 1  ;;  %p155_p3 = scmp.eq.s32.totalorder %s449_s22, 1 }
   0xc   : > { %p776_p4 = por %p766_p1, %p55_p0  ;;  %p450_p5 = scmp.ge.s32.totalorder %s699_s20, 1 }
   0xd   : > { %p781_p6 = por %p155_p3, %p55_p0  ;;  %p162_p7 = scmp.lt.s32.totalorder %s699_s20, 3 }
   0xe   : > { %s910_s1 = sld [smem:[#allocation12_spill]]  ;;  %s701_s5 = smov [#allocation5]  }
   0xf   : > { %p789_p8 = pnand %p450_p5, %p162_p7  ;;  %s178_s6 = sshll.u32 %s701_s5, 4  ;;  %s179_s6 = int_to_ptr.vmem [resolvable:$true] %s178_s6 }
  0x10   : > { %p452_p11 = scmp.ge.s32.totalorder %s699_s20, 2  ;;  %s902_s7 = smov 128  }
  0x11   : > { %p475_p9 = pneg %p789_p8  ;;  %s903_s8 = smov 8  }
  0x12   : > { %s30_s9 = sadd.s32 1, %s695_s19  ;;  %s42_s10 = sadd.s32 1, %s687_s17 }
  0x13   : > { %p476_p10 = pnand %p475_p9, %p766_p1  ;;  %p31_p12 = scmp.ge.s32.totalorder %s30_s9, 2 }
  0x14   : > { %s176_s29 = sshll.u32 %s910_s1, 4  ;;  %p49_p13 = scmp.ne.s32.totalorder %s687_s17, %s683_s16  ;;  %s177_s29 = int_to_ptr.hbm [resolvable:$true] %s176_s29 }
  0x15   : > { %478 = dma.hbm_to_vmem [thread:$0]  (!%p476_p10), %s177_s29, 256, %s179_s6, [#allocation6], %s902_s7, %s902_s7, %s903_s8  }
  0x16   : > { %p50_p0 = scmp.eq.s32.totalorder %s699_s20, 0  ;;  %s924_s9 = smov (%p31_p12, %s30_s9), 0 }
  0x17   : > { %912 = sst [smem:[#allocation11_spill]] %s924_s9  ;;  %p814_p5 = por %p770_p2, %p49_p13 }
  0x18   : > { %p808_p3 = por %p50_p0, %p49_p13  ;;  %s37_s13 = ssub.s32 %s695_s19, %s924_s9 }
  0x19   : > { %p488_p7 = scmp.lt.s32.totalorder %s699_s20, 2  ;;  %p40_p9 = scmp.eq.s32.totalorder %s37_s13, 0 }
  0x1a   : > { %s198_s14 = sand.u32 1, %s687_s17   ;;  %s465_s27 = sshll.u32 %s695_s19, 4 }
  0x1b   : > { %s453_s21 = sshll.u32 %s198_s14, 4  ;;  %s209_s5 = scalar_lea.hbm %s897_s0, %s465_s27 }
  0x1c   : > { %s823_s22 = scalar_select %p40_p9, %s687_s17, %s42_s10  }
  0x1d   : > { %s202_s6 = scalar_lea.vmem [#allocation2], %s453_s21  ;;  %s210_s24 = sshll.u32 %s209_s5, 4  ;;  %s211_s24 = int_to_ptr.hbm [resolvable:$true] %s210_s24 }
  0x1e   : > { %s212_s7 = sshll.u32 %s202_s6, 4  ;;  %p480_p2 = pnand %p488_p7, %p808_p3  ;;  %s213_s7 = int_to_ptr.vmem [resolvable:$true] %s212_s7 }
  0x1f   : > { %s199_s8 = scalar_lea.sflag [#allocation3], %s198_s14  ;;  %s915_s1 = smov 8  }
  0x20   : > { %s916_s9 = smov 128   ;;  %224 = sbr.rel (%p789_p8) target bundleno = 322 (0x142), region = 36 }
  0x21   : > { %482 = dma.hbm_to_vmem [thread:$0]  (!%p480_p2), %s211_s24, 256, %s213_s7, %s199_s8, %s916_s9, %s916_s9, %s915_s1  }
  0x22   : > { %s837_s10 = sand.u32 (!%p789_p8), 1, %s683_s16  }
  0x23   : > { %s457_s13 = sshll.u32 (!%p789_p8), %s837_s10, 4  ;;  %s227_s21 = scalar_lea.sflag (!%p789_p8), [#allocation3], %s837_s10 }
  0x24   : > { %s230_s11 = scalar_lea.vmem (!%p789_p8), [#allocation2], %s457_s13 }
  0x25   : > { %666 = dma.done.wait (%p776_p4), %s227_s21, 256  }
  0x26   : > { %668 = vsyncadd (%p776_p4), %s227_s21, 4294967040 }
  0x27   : > { %670 = dma.done.wait (%p766_p1), [#allocation6], 256  }
  0x28   : > { %672 = vsyncadd (%p766_p1), [#allocation6], 4294967040  ;;  %v264_v0 = vld [vmem:[%s230_s11] sm:$0xff]  ;;  %v265_v3 = vld [vmem:[%s230_s11 + $0x8] sm:$0xff]  ;;  %v704_v6 = vmov 128.0   ;;  %s466_s7 = sshll.u32 %s691_s18, 4 }
  0x29   : > { %v266_v1 = vld [vmem:[#allocation5] sm:$0xff]  ;;  %v267_v4 = vld [vmem:[#allocation5 + $0x8] sm:$0xff]  ;;  %547 = vrcp.f32 %v704_v6  ;;  %s345_s14 = scalar_lea.hbm %s901_s4, %s466_s7  ;;  %s260_s27 = scalar_lea.vmem [#allocation7], %s457_s13 }
  0x2a   : > { %v268_v2 = vadd.f32 %v266_v1, %v264_v0  ;;  %v269_v5 = vadd.f32 %v267_v4, %v265_v3  ;;  %v545_v35 = vld [vmem:[%s899_s2] ss:$0 sm:$0xff]  ;;  %s346_s28 = sshll.u32 %s260_s27, 4  ;;  %s348_s29 = sshll.u32 %s345_s14, 4  ;;  %s347_s28 = int_to_ptr.vmem [resolvable:$true] %s346_s28  ;;  %s349_s29 = int_to_ptr.hbm [resolvable:$true] %s348_s29 }
  0x2b   : > { %v546_v38 = vld [vmem:[%s900_s3] ss:$0 sm:$0xff]  ;;  %s332_s18 = scalar_lea.sflag [#allocation4], %s837_s10  ;;  %s627_s5 = sshra.s32 %s349_s29, 4  ;;  %s628_s5 = int_to_ptr.hbm [resolvable:$true] %s627_s5 }
  0x2c   : > { %270 = vadd.xlane.f32.xlu0 %v268_v2  ;;  %s629_s6 = scalar_lea.hbm %s628_s5, 16  ;;  %s633_s21 = scalar_lea.hbm %s901_s4, 32 }
  0x2d   : > { %p630_p1 = scmp.ne.s32.totalorder %s628_s5, %s629_s6  ;;  %p634_p10 = scmp.lt.s32.totalorder %s628_s5, %s901_s4 }
  0x2e   : > { %p635_p12 = scmp.lt.s32.totalorder %s633_s21, %s629_s6 }
  0x2f   : > { %v548_v7 = vpop.eup %547  ;;  %p631_p4 = pnand %p630_p1, %p814_p5 }
  0x30   : > { %v275_v8 = vmul.f32 128.0, %v548_v7  ;;  %vm279_vm0 = vweird.f32 %v548_v7  ;;  %p636_p13 = por %p635_p12, %p634_p10 }
  0x31   : > { %p632_p8 = pneg %p631_p4 }
  0x32   : > { %v276_v9 = vsub.f32 1.0, %v275_v8 }
  0x33   : > { %p637_p0 = pnand %p636_p13, %p632_p8 }
  0x34   : > { %272 = vadd.xlane.f32.xlu0 %v269_v5  ;;  %v277_v10 = vmul.f32 %v548_v7, %v276_v9 }
  0x36   : > { %v278_v11 = vadd.f32 %v548_v7, %v277_v10 }
  0x38   : > { %v280_v12 = vsel %vm279_vm0, %v548_v7, %v278_v11 }
  0x9f   : > { %v271_v13 = vpop.xlane.xlu0 %270 }
  0xa0   : > { %v281_v14 = vmul.f32 %v280_v12, %v271_v13 }
  0xa2   : > { %v283_v15 = vsub.f32 %v268_v2, %v281_v14 }
  0xa4   : > { %v285_v16 = vmul.f32 %v283_v15, %v283_v15 }
  0xa6   : > { %287 = vadd.xlane.f32.xlu1 %v285_v16 }
  0xa7   : > { %v273_v17 = vpop.xlane.xlu0 %272 }
  0xa8   : > { %v282_v18 = vmul.f32 %v280_v12, %v273_v17 }
  0xaa   : > { %v284_v19 = vsub.f32 %v269_v5, %v282_v18 }
  0xac   : > { %v286_v20 = vmul.f32 %v284_v19, %v284_v19 }
  0xae   : > { %289 = vadd.xlane.f32.xlu1 %v286_v20 }
 0x119   : > { %v288_v21 = vpop.xlane.xlu1 %287 }
 0x11a   : > { %v291_v22 = vmul.f32 %v288_v21, %v280_v12 }
 0x11c   : > { %v293_v23 = vadd.f32 1e-12, %v291_v22 }
 0x11e   : > { %549 = vrsqrt.f32 %v293_v23  ;;  %vm301_vm2 = vweird.f32 %v293_v23 }
 0x121   : > { %v290_v24 = vpop.xlane.xlu1 %289 }
 0x122   : > { %v292_v25 = vmul.f32 %v290_v24, %v280_v12 }
 0x124   : > { %v550_v26 = vpop.eup %549  ;;  %v294_v27 = vadd.f32 1e-12, %v292_v25 }
 0x125   : > { %v296_v28 = vmul.f32 %v550_v26, %v293_v23  ;;  %vm302_vm1 = vweird.f32 %v550_v26 }
 0x126   : > { %551 = vrsqrt.f32 %v294_v27  ;;  %vm303_vm3 = vmor %vm301_vm2, %vm302_vm1  ;;  %vm311_vm5 = vweird.f32 %v294_v27 }
 0x127   : > { %v297_v29 = vmul.f32 %v550_v26, %v296_v28 }
 0x129   : > { %v298_v30 = vmul.f32 0.5, %v297_v29 }
 0x12b   : > { %v299_v31 = vsub.f32 1.5, %v298_v30 }
 0x12c   : > { %v552_v32 = vpop.eup %551 }
 0x12d   : > { %v300_v33 = vmul.f32 %v550_v26, %v299_v31  ;;  %v306_v34 = vmul.f32 %v552_v32, %v294_v27  ;;  %vm312_vm4 = vweird.f32 %v552_v32 }
 0x12e   : > { %vm313_vm6 = vmor %vm311_vm5, %vm312_vm4 }
 0x12f   : > { %v304_v36 = vsel %vm303_vm3, %v550_v26, %v300_v33  ;;  %v307_v37 = vmul.f32 %v552_v32, %v306_v34 }
 0x130   : > { %v315_v39 = vmul.f32 %v304_v36, %v283_v15 }
 0x131   : > { %v308_v40 = vmul.f32 0.5, %v307_v37 }
 0x132   : > { %v321_v41 = vmul.f32 %v545_v35, %v315_v39 }
 0x133   : > { %v309_v42 = vsub.f32 1.5, %v308_v40 }
 0x134   : > { %v327_v43 = vadd.f32 %v546_v38, %v321_v41 }
 0x135   : > { %v310_v44 = vmul.f32 %v552_v32, %v309_v42 }
 0x136   : > { %329 = vst [vmem:[%s260_s27] sm:$0xff] %v327_v43 }
 0x137   : > { %v314_v45 = vsel %vm313_vm6, %v552_v32, %v310_v44 }
 0x138   : > { %v316_v46 = vmul.f32 %v314_v45, %v284_v19 }
 0x13a   : > { %v322_v47 = vmul.f32 %v545_v35, %v316_v46 }
 0x13c   : > { %v328_v48 = vadd.f32 %v546_v38, %v322_v47 }
 0x13e   : > { %330 = vst [vmem:[%s260_s27 + $0x8] sm:$0xff] %v328_v48 }
 0x13f   : > { %640 = shalt.err (!%p637_p0)
}
 0x140   : > { %s705_s10 = smov 128   ;;  %s706_s23 = smov 8  }
 0x141   : > { %473 = dma.vmem_to_hbm [thread:$0]  (%p814_p5), %s347_s28, 256, %s349_s29, %s332_s18, %s705_s10, %s705_s10, %s706_s23  }
 0x142 PF: > { %s363_s25 = sand.u32 1, %s679_s15   ;;  %p484_p3 = pnand %p452_p11, %p781_p6 }
 0x143   : > { %s364_s30 = scalar_lea.sflag [#allocation4], %s363_s25 }
 0x144   : > { %p485_p7 = pneg %p484_p3 }
 0x146   : > { %674 = dma.done.wait (%p485_p7), %s364_s30, 256  }
 0x147   : > { %676 = vsyncadd (%p485_p7), %s364_s30, 4294967040  ;;  %s21_s20 = sadd.s32 1, %s699_s20   ;;  %s917_s12 = sld [smem:[#allocation11_spill]] }
 0x148   : > { %p18_p9 = scmp.ge.s32.totalorder %s21_s20, 4   ;;  %s918_s15 = smov %s683_s16 }
 0x149   : > { %s919_s16 = smov %s687_s17  ;;  %s920_s17 = smov %s823_s22 }
 0x14a   : > { %s921_s18 = smov %s695_s19  ;;  %20 = sbr.rel (!%p18_p9) target bundleno = 9 (0x9), region = 86 }
 0x14d   : > { %s922_s19 = smov %s917_s12 }
 0x14f   :  { %370 = vsyncpa [#allocation3], 1 }
 0x150   :  { %372 = vsyncpa [#allocation3 + $0x1], 1 }
 0x151   :  { %373 = vsyncpa [#allocation6], 1 }
 0x152   :  { %374 = vsyncpa [#allocation4], 1 }
 0x153   :  { %376 = vsyncpa [#allocation4 + $0x1], 1 }

</bundles_post_ra>
